<compile_context>
chip_gen: v6e
topology: v6e:2x2x1
jax: 0.10.0
libtpu: 0.0.40
codegen_flags: <defaults>
</compile_context>

<pallas_src>
import jax
import jax.numpy as jnp
from jax.experimental import pallas as pl
from jax.experimental.pallas import tpu as pltpu

LANES = 128      # lane width of every slab / padded tensor
HIDDEN = 128     # module hidden_dim (fixed at 128 in SafetyActorModel)
OUT_PAD = 128    # lane-dense padded width of the pi head / output block
RL_LANE = LANES - 1  # rl_indice lives in the last lane of the activation slab

# Row layout of the packed parameter slab (every offset is a multiple of 8).
_W1_OFF = 0                      # [128, 128] fc1 weight (input lanes padded)
_B1_OFF = _W1_OFF + LANES        # 8-row block, row 0 = fc1 bias
_W2_OFF = _B1_OFF + 8            # [128, 128] fc2 weight
_B2_OFF = _W2_OFF + HIDDEN       # 8-row block, row 0 = fc2 bias
_W3_OFF = _B2_OFF + 8            # [128, 128] pi weight (output lanes padded)
_B3_OFF = _W3_OFF + HIDDEN       # 8-row block, row 0 = pi bias (lane-padded)
_P_ROWS = _B3_OFF + 8            # 408 rows total (~209 KB f32)


def _mlp_logits(x, p_ref):
    """3-layer MLP on a packed activation slab. Returns [N, OUT_PAD] f32 logits."""
    w1 = p_ref[_W1_OFF:_W1_OFF + LANES, :]
    b1 = p_ref[_B1_OFF:_B1_OFF + 1, :]
    w2 = p_ref[_W2_OFF:_W2_OFF + HIDDEN, :]
    b2 = p_ref[_B2_OFF:_B2_OFF + 1, :]
    w3 = p_ref[_W3_OFF:_W3_OFF + HIDDEN, :]
    b3 = p_ref[_B3_OFF:_B3_OFF + 1, :]
    # fc1: single dot against the zero-padded [128, H] weight (rows >= F+A are
    # exact zeros, so the rl_indice lane contributes nothing).
    h1 = jnp.maximum(jnp.dot(x, w1, preferred_element_type=jnp.float32) + b1, 0.0)
    h2 = jnp.maximum(jnp.dot(h1, w2, preferred_element_type=jnp.float32) + b2, 0.0)
    # pi head, lane-padded to OUT_PAD columns (padding columns are exact zeros).
    return jnp.dot(h2, w3, preferred_element_type=jnp.float32) + b3


def _safety_actor_kernel_nomask(x_ref, p_ref, out_ref):
    x = x_ref[...]                                  # [N, 128]
    logits = _mlp_logits(x, p_ref)                  # [N, 128]
    rl = x[:, RL_LANE:RL_LANE + 1]                  # [N, 1] rl_indice mask
    out_ref[...] = (logits * rl).astype(out_ref.dtype)


def _safety_actor_kernel_masked(x_ref, p_ref, out_ref):
    n = out_ref.shape[0]
    npad = x_ref.shape[0] // 2                      # sublane-aligned band height
    x = x_ref[0:n, :]                               # activation band
    amb = x_ref[npad:npad + n, :]                   # actions_mask band (pad = 1.0)
    logits = _mlp_logits(x, p_ref)
    rl = x[:, RL_LANE:RL_LANE + 1]
    # In-kernel bias: amask*1e10 - 1e10; padded lanes are 1.0 -> bias exactly 0.
    abias = amb * 1e10 - 1e10
    out_ref[...] = (logits * rl + abias).astype(out_ref.dtype)


_VMEM_SPEC = pl.BlockSpec(memory_space=pltpu.MemorySpace.VMEM)
_COST = pl.CostEstimate(flops=790_000, transcendentals=0, bytes_accessed=225_000)


def _pack_activations(features, rl_indice, action_probs):
    n, f = features.shape
    a = action_probs.shape[1]
    assert f + a < LANES, "feature+action width must fit in one 128-lane slab"
    pad = jnp.zeros((n, LANES - f - a - 1), jnp.float32)
    return jnp.concatenate(
        [features, action_probs, pad, rl_indice.reshape(n, 1)], axis=1)


@jax.jit
def _forward_nomask(features, rl_indice, action_probs, param_slab):
    n = features.shape[0]
    a = action_probs.shape[1]
    x_slab = _pack_activations(features, rl_indice, action_probs)
    out_pad = pl.pallas_call(
        _safety_actor_kernel_nomask,
        out_shape=jax.ShapeDtypeStruct((n, OUT_PAD), jnp.float32),
        in_specs=[_VMEM_SPEC, _VMEM_SPEC],
        out_specs=_VMEM_SPEC,
        cost_estimate=_COST,
    )(x_slab, param_slab)
    return out_pad[:, :a]


@jax.jit
def _forward_masked(features, rl_indice, action_probs, actions_mask, param_slab):
    n = features.shape[0]
    a = action_probs.shape[1]
    npad = ((n + 7) // 8) * 8
    x_band = _pack_activations(features, rl_indice, action_probs)
    # actions_mask band: lanes 0:A = mask, remaining lanes = 1.0 (bias -> 0).
    am_band = jnp.ones((n, LANES), jnp.float32).at[:, :a].set(actions_mask)
    if npad > n:
        zpad = jnp.zeros((npad - n, LANES), jnp.float32)
        x_band = jnp.concatenate([x_band, zpad], axis=0)
        am_band = jnp.concatenate([am_band, zpad + 1.0], axis=0)
    x_slab = jnp.concatenate([x_band, am_band], axis=0)      # [2*npad, 128]
    out_pad = pl.pallas_call(
        _safety_actor_kernel_masked,
        out_shape=jax.ShapeDtypeStruct((n, OUT_PAD), jnp.float32),
        in_specs=[_VMEM_SPEC, _VMEM_SPEC],
        out_specs=_VMEM_SPEC,
        cost_estimate=_COST,
    )(x_slab, param_slab)
    return out_pad[:, :a]


def safety_actor_forward(features, rl_indice, action_probs, param_slab,
                         actions_mask=None):
    """Reproduces SafetyActorModel.forward. `param_slab` from prepare_params()."""
    features = jnp.asarray(features, jnp.float32)
    action_probs = jnp.asarray(action_probs, jnp.float32)
    rl_indice = jnp.asarray(rl_indice, jnp.float32)
    if actions_mask is None:
        return _forward_nomask(features, rl_indice, action_probs, param_slab)
    actions_mask = jnp.asarray(actions_mask, jnp.float32)
    return _forward_masked(features, rl_indice, action_probs, actions_mask,
                           param_slab)


def prepare_params(params, f_dim, a_dim):
    """One-time layout prep: pack all parameters into one [408, 128] VMEM slab."""
    w1, b1, w2, b2, w3, b3 = params
    hidden = w2.shape[0]
    assert hidden == HIDDEN, "SafetyActorModel fixes hidden_dim=128"
    w1_pad = jnp.zeros((LANES, hidden), jnp.float32).at[:f_dim + a_dim, :].set(w1)
    w3_pad = jnp.zeros((hidden, OUT_PAD), jnp.float32).at[:, :a_dim].set(w3)
    b3_pad = jnp.zeros((1, OUT_PAD), jnp.float32).at[:, :a_dim].set(b3)

    def row_block(mat, rows):
        blk = jnp.zeros((rows, LANES), jnp.float32)
        return blk.at[:mat.shape[0], :mat.shape[1]].set(mat)

    slab = jnp.concatenate([
        row_block(w1_pad, LANES),   # rows   0..127
        row_block(b1, 8),           # rows 128..135
        row_block(w2, HIDDEN),      # rows 136..263
        row_block(b2, 8),           # rows 264..271
        row_block(w3_pad, HIDDEN),  # rows 272..399
        row_block(b3_pad, 8),       # rows 400..407
    ], axis=0)
    assert slab.shape == (_P_ROWS, LANES)
    return slab


def init_params(key, input_dim, hidden_dim, output_dim):
    """Deterministic synthetic parameters (shapes match the nn.Linear layers,
    stored transposed so the kernel computes x @ W)."""
    k1, k2, k3, k4, k5, k6 = jax.random.split(key, 6)
    scale = 0.1
    w1 = scale * jax.random.normal(k1, (input_dim, hidden_dim), jnp.float32)
    b1 = scale * jax.random.normal(k2, (1, hidden_dim), jnp.float32)
    w2 = scale * jax.random.normal(k3, (hidden_dim, hidden_dim), jnp.float32)
    b2 = scale * jax.random.normal(k4, (1, hidden_dim), jnp.float32)
    w3 = scale * jax.random.normal(k5, (hidden_dim, output_dim), jnp.float32)
    b3 = scale * jax.random.normal(k6, (1, output_dim), jnp.float32)
    return (w1, b1, w2, b2, w3, b3)


if __name__ == "__main__":
    # Small, module-consistent shapes: N agents, F per-agent features, A actions.
    N, F_DIM, A_DIM = 8, 28, 4
    INPUT_DIM = F_DIM + A_DIM          # 32
    HIDDEN_DIM = 128
    OUTPUT_DIM = A_DIM

    key = jax.random.PRNGKey(0)
    k_feat, k_act, k_mask, k_amask, k_params = jax.random.split(key, 5)

    features = jax.random.normal(k_feat, (N, F_DIM), jnp.float32)                # states[0]
    rl_indice = (jax.random.uniform(k_mask, (N,)) > 0.3).astype(jnp.float32)     # states[2]
    action_probs = jax.nn.softmax(jax.random.normal(k_act, (N, A_DIM)), axis=-1)
    actions_mask = (jax.random.uniform(k_amask, (N, A_DIM)) > 0.2).astype(jnp.float32)

    params = init_params(k_params, INPUT_DIM, HIDDEN_DIM, OUTPUT_DIM)
    param_slab = prepare_params(params, F_DIM, A_DIM)

    # Run once without actions_mask and once with it (both code paths of forward).
    out_no_mask = safety_actor_forward(features, rl_indice, action_probs, param_slab)
    out_masked = safety_actor_forward(features, rl_indice, action_probs, param_slab,
                                      actions_mask=actions_mask)
    jax.block_until_ready(out_no_mask)
    jax.block_until_ready(out_masked)

    # Reference check in plain JAX (same math as the PyTorch forward).
    w1, b1, w2, b2, w3, b3 = params
    x = jnp.concatenate([features, action_probs], axis=1)
    h1 = jnp.maximum(x @ w1 + b1, 0.0)
    h2 = jnp.maximum(h1 @ w2 + b2, 0.0)
    ref = (h2 @ w3 + b3) * rl_indice.reshape(N, 1)
    ref_masked = ref + (actions_mask * 1e10 - 1e10)

    assert out_no_mask.shape == (N, A_DIM)
    assert out_masked.shape == (N, A_DIM)
    assert jnp.allclose(out_no_mask, ref, atol=1e-4, rtol=1e-4)
    assert jnp.allclose(out_masked, ref_masked, atol=1e-2, rtol=1e-4)

    print("KERNEL_OK")
</pallas_src>

<mosaic_0001>
module attributes {stable_mosaic.version = 11 : i64} {
  func.func @_safety_actor_kernel_nomask(%arg0: memref<8x128xf32, #tpu.memory_space<vmem>>, %arg1: memref<408x128xf32, #tpu.memory_space<vmem>>, %arg2: memref<8x128xf32, #tpu.memory_space<vmem>>) attributes {dimension_semantics = [], scalar_prefetch = 0 : i64, scratch_operands = 0 : i64, tpu.core_type = #tpu.core_type<tc>} {
    %c0 = arith.constant 0 : index
    %c0_0 = arith.constant 0 : index
    %0 = vector.load %arg0[%c0, %c0_0] : memref<8x128xf32, #tpu.memory_space<vmem>>, vector<8x128xf32>
    %c0_1 = arith.constant 0 : index
    %c0_2 = arith.constant 0 : index
    %1 = vector.load %arg1[%c0_1, %c0_2] : memref<408x128xf32, #tpu.memory_space<vmem>>, vector<128x128xf32>
    %c128 = arith.constant 128 : index
    %c0_3 = arith.constant 0 : index
    %2 = vector.load %arg1[%c128, %c0_3] : memref<408x128xf32, #tpu.memory_space<vmem>>, vector<1x128xf32>
    %c136 = arith.constant 136 : index
    %c0_4 = arith.constant 0 : index
    %3 = vector.load %arg1[%c136, %c0_4] : memref<408x128xf32, #tpu.memory_space<vmem>>, vector<128x128xf32>
    %c264 = arith.constant 264 : index
    %c0_5 = arith.constant 0 : index
    %4 = vector.load %arg1[%c264, %c0_5] : memref<408x128xf32, #tpu.memory_space<vmem>>, vector<1x128xf32>
    %c272 = arith.constant 272 : index
    %c0_6 = arith.constant 0 : index
    %5 = vector.load %arg1[%c272, %c0_6] : memref<408x128xf32, #tpu.memory_space<vmem>>, vector<128x128xf32>
    %c400 = arith.constant 400 : index
    %c0_7 = arith.constant 0 : index
    %6 = vector.load %arg1[%c400, %c0_7] : memref<408x128xf32, #tpu.memory_space<vmem>>, vector<1x128xf32>
    %cst = arith.constant dense<0.000000e+00> : vector<8x128xf32>
    %7 = tpu.matmul %0, %1, %cst {dimension_numbers = #tpu.dot_dimension_numbers<[1], [0], [0], [1], [0, 0, 1, 1], [], []>} : vector<8x128xf32>, vector<128x128xf32>, vector<8x128xf32> -> vector<8x128xf32>
    %8 = vector.broadcast %2 : vector<1x128xf32> to vector<8x128xf32>
    %9 = arith.addf %7, %8 : vector<8x128xf32>
    %cst_8 = arith.constant 0.000000e+00 : f32
    %10 = vector.broadcast %cst_8 : f32 to vector<8x128xf32>
    %11 = arith.maximumf %9, %10 : vector<8x128xf32>
    %cst_9 = arith.constant dense<0.000000e+00> : vector<8x128xf32>
    %12 = tpu.matmul %11, %3, %cst_9 {dimension_numbers = #tpu.dot_dimension_numbers<[1], [0], [0], [1], [0, 0, 1, 1], [], []>} : vector<8x128xf32>, vector<128x128xf32>, vector<8x128xf32> -> vector<8x128xf32>
    %13 = vector.broadcast %4 : vector<1x128xf32> to vector<8x128xf32>
    %14 = arith.addf %12, %13 : vector<8x128xf32>
    %cst_10 = arith.constant 0.000000e+00 : f32
    %15 = vector.broadcast %cst_10 : f32 to vector<8x128xf32>
    %16 = arith.maximumf %14, %15 : vector<8x128xf32>
    %cst_11 = arith.constant dense<0.000000e+00> : vector<8x128xf32>
    %17 = tpu.matmul %16, %5, %cst_11 {dimension_numbers = #tpu.dot_dimension_numbers<[1], [0], [0], [1], [0, 0, 1, 1], [], []>} : vector<8x128xf32>, vector<128x128xf32>, vector<8x128xf32> -> vector<8x128xf32>
    %18 = vector.broadcast %6 : vector<1x128xf32> to vector<8x128xf32>
    %19 = arith.addf %17, %18 : vector<8x128xf32>
    %20 = vector.extract_strided_slice %0 {offsets = [0, 127], sizes = [8, 1], strides = [1, 1]} : vector<8x128xf32> to vector<8x1xf32>
    %21 = vector.broadcast %20 : vector<8x1xf32> to vector<8x128xf32>
    %22 = arith.mulf %19, %21 : vector<8x128xf32>
    %c0_12 = arith.constant 0 : index
    %c0_13 = arith.constant 0 : index
    %23 = vector.load %arg2[%c0_12, %c0_13] : memref<8x128xf32, #tpu.memory_space<vmem>>, vector<8x128xf32>
    tpu.vector_store %arg2[%c0_12, %c0_13], %22 {strides = array<i32>} : memref<8x128xf32, #tpu.memory_space<vmem>>, vector<8x128xf32>,
    return
  }
}

</mosaic_0001>

<bundles_post_ra>
// kernel: _forward_nomask.1
= control target key start
LH: loop header
LB: loop body
LE: loop exit
PB: predicated region body
PF: predicated region fallthrough
CT: control target
= control target key end

     0   :  { %7 = vsyncpa [#allocation3], 0  ;;  %s501_s9 = smov [#allocation2]   ;;  %s589_s0 = inlined_call_operand.vmem [shape: f32[8,128], index: 0, kind: input, shape index: {}]   ;;  %s590_s1 = inlined_call_operand.hbm [shape: f32[408,128], index: 1, kind: input, shape index: {}]   ;;  %s591_s2 = inlined_call_operand.vmem [shape: f32[8,128], index: 2, kind: output, shape index: {}]  }
   0x1   :  { %s15_s10 = sshll.u32 %s501_s9, 4  ;;  %s16_s10 = int_to_ptr.vmem [resolvable:$true] %s15_s10 }
   0x2   :  { %s487_s11 = scalar_lea.vmem %s16_s10, 6528  ;;  %p492_p1 = scmp.lt.s32.totalorder %s16_s10, %s16_s10 }
   0x3   :  { %p488_p0 = scmp.ne.s32.totalorder %s16_s10, %s487_s11  ;;  %p493_p2 = scmp.lt.s32.totalorder %s487_s11, %s487_s11 }
   0x5   :  { %p494_p3 = por %p493_p2, %p492_p1 }
   0x7   :  { %p495_p4 = pnand %p494_p3, %p488_p0 }
   0x9   :  { %498 = shalt.err (!%p495_p4)
}
   0xa   :  { %s502_s12 = smov 128   ;;  %s503_s13 = smov 8  }
   0xb   :  { %21 = dma.hbm_to_vmem [thread:$0]  %s590_s1, 6528, %s16_s10, [#allocation3], %s502_s12, %s502_s12, %s503_s13  }
   0xc   :  { %499 = dma.done.wait [#allocation3], 6528  }
   0xd   :  { %500 = vsyncadd [#allocation3], 4294960768  ;;  %v504_v0 = vmov 0.0   ;;  %vm505_vm0 = vmmov 0   ;;  %v41_v1 = vld [vmem:[#allocation2 + $0x78] sm:$0xff]  ;;  %v40_v2 = vld [vmem:[#allocation2 + $0x70] sm:$0xff] }
   0xe   :  { %367 = vmatprep.subr.mxu0 %v504_v0  ;;  %399 = vmatprep.mubr.msk.f32.mxu0 %vm505_vm0, %v504_v0  ;;  %v39_v3 = vld [vmem:[#allocation2 + $0x68] sm:$0xff]  ;;  %v38_v4 = vld [vmem:[#allocation2 + $0x60] sm:$0xff]  ;;  %v37_v6 = vld [vmem:[#allocation2 + $0x58] sm:$0xff]  ;;  %v506_v55 = vmov 127  }
   0xf   :  { %402 = vmatprep.subr.mxu1 %v504_v0  ;;  %434 = vmatprep.mubr.msk.f32.mxu1 %vm505_vm0, %v504_v0  ;;  %v58_v5 = vld [vmem:[#allocation2 + $0x100] sm:$0xff]  ;;  %v57_v7 = vld [vmem:[#allocation2 + $0xf8] sm:$0xff]  ;;  %v56_v8 = vld [vmem:[#allocation2 + $0xf0] sm:$0xff] }
  0x10   :  { %368 = vmatpush3.msra.mxu0 %v41_v1  ;;  %403 = vmatpush3.msra.mxu1 %v58_v5  ;;  %v36_v9 = vld [vmem:[#allocation2 + $0x50] sm:$0xff]  ;;  %v55_v10 = vld [vmem:[#allocation2 + $0xe8] sm:$0xff]  ;;  %v54_v12 = vld [vmem:[#allocation2 + $0xe0] sm:$0xff] }
  0x11   :  { %369 = vmatprep.subr.mxu0 %v504_v0  ;;  %404 = vmatprep.subr.mxu1 %v504_v0  ;;  %v35_v11 = vld [vmem:[#allocation2 + $0x48] sm:$0xff]  ;;  %v34_v13 = vld [vmem:[#allocation2 + $0x40] sm:$0xff]  ;;  %v53_v14 = vld [vmem:[#allocation2 + $0xd8] sm:$0xff] }
  0x12   :  { %370 = vmatpush3.msra.mxu0 %v40_v2  ;;  %405 = vmatpush3.msra.mxu1 %v57_v7  ;;  %v33_v15 = vld [vmem:[#allocation2 + $0x38] sm:$0xff]  ;;  %v52_v16 = vld [vmem:[#allocation2 + $0xd0] sm:$0xff]  ;;  %v51_v18 = vld [vmem:[#allocation2 + $0xc8] sm:$0xff] }
  0x13   :  { %371 = vmatprep.subr.mxu0 %v504_v0  ;;  %406 = vmatprep.subr.mxu1 %v504_v0  ;;  %v32_v17 = vld [vmem:[#allocation2 + $0x30] sm:$0xff]  ;;  %v31_v19 = vld [vmem:[#allocation2 + $0x28] sm:$0xff]  ;;  %v50_v20 = vld [vmem:[#allocation2 + $0xc0] sm:$0xff] }
  0x14   :  { %372 = vmatpush3.msra.mxu0 %v39_v3  ;;  %407 = vmatpush3.msra.mxu1 %v56_v8  ;;  %v30_v21 = vld [vmem:[#allocation2 + $0x20] sm:$0xff]  ;;  %v49_v22 = vld [vmem:[#allocation2 + $0xb8] sm:$0xff]  ;;  %v48_v24 = vld [vmem:[#allocation2 + $0xb0] sm:$0xff] }
  0x15   :  { %373 = vmatprep.subr.mxu0 %v504_v0  ;;  %408 = vmatprep.subr.mxu1 %v504_v0  ;;  %v29_v23 = vld [vmem:[#allocation2 + $0x18] sm:$0xff]  ;;  %v28_v25 = vld [vmem:[#allocation2 + $0x10] sm:$0xff]  ;;  %v47_v26 = vld [vmem:[#allocation2 + $0xa8] sm:$0xff] }
  0x16   :  { %374 = vmatpush3.msra.mxu0 %v38_v4  ;;  %409 = vmatpush3.msra.mxu1 %v55_v10  ;;  %v27_v27 = vld [vmem:[#allocation2 + $0x8] sm:$0xff]  ;;  %v46_v28 = vld [vmem:[#allocation2 + $0xa0] sm:$0xff]  ;;  %v45_v31 = vld [vmem:[#allocation2 + $0x98] sm:$0xff] }
  0x17   :  { %375 = vmatprep.subr.mxu0 %v504_v0  ;;  %410 = vmatprep.subr.mxu1 %v504_v0  ;;  %v26_v29 = vld [vmem:[#allocation2] sm:$0xff]  ;;  %v44_v32 = vld [vmem:[#allocation2 + $0x90] sm:$0xff]  ;;  %v43_v33 = vld [vmem:[#allocation2 + $0x88] sm:$0xff] }
  0x18   :  { %376 = vmatpush3.msra.mxu0 %v37_v6  ;;  %411 = vmatpush3.msra.mxu1 %v54_v12  ;;  %v559_v30 = vld [vmem:[%s589_s0] sm:$0xff]  ;;  %v75_v34 = vld [vmem:[#allocation2 + $0x188] sm:$0xff]  ;;  %v73_v36 = vld [vmem:[#allocation2 + $0x178] sm:$0xff] }
  0x19   :  { %377 = vmatprep.subr.mxu0 %v504_v0  ;;  %412 = vmatprep.subr.mxu1 %v504_v0  ;;  %v74_v35 = vld [vmem:[#allocation2 + $0x180] sm:$0xff]  ;;  %v72_v37 = vld [vmem:[#allocation2 + $0x170] sm:$0xff]  ;;  %v71_v38 = vld [vmem:[#allocation2 + $0x168] sm:$0xff] }
  0x1a   :  { %378 = vmatpush3.msra.mxu0 %v36_v9  ;;  %413 = vmatpush3.msra.mxu1 %v53_v14  ;;  %v70_v39 = vld [vmem:[#allocation2 + $0x160] sm:$0xff]  ;;  %v69_v40 = vld [vmem:[#allocation2 + $0x158] sm:$0xff]  ;;  %v68_v41 = vld [vmem:[#allocation2 + $0x150] sm:$0xff] }
  0x1b   :  { %379 = vmatprep.subr.mxu0 %v504_v0  ;;  %414 = vmatprep.subr.mxu1 %v504_v0  ;;  %v67_v42 = vld [vmem:[#allocation2 + $0x148] sm:$0xff]  ;;  %v66_v43 = vld [vmem:[#allocation2 + $0x140] sm:$0xff]  ;;  %v65_v44 = vld [vmem:[#allocation2 + $0x138] sm:$0xff] }
  0x1c   :  { %380 = vmatpush3.msra.mxu0 %v35_v11  ;;  %415 = vmatpush3.msra.mxu1 %v52_v16  ;;  %v64_v45 = vld [vmem:[#allocation2 + $0x130] sm:$0xff]  ;;  %v63_v46 = vld [vmem:[#allocation2 + $0x128] sm:$0xff]  ;;  %v313_v47 = vld [vmem:[#allocation2 + $0x80] ss:$0 sm:$0xff] }
  0x1d   :  { %381 = vmatprep.subr.mxu0 %v504_v0  ;;  %416 = vmatprep.subr.mxu1 %v504_v0  ;;  %v62_v52 = vld [vmem:[#allocation2 + $0x120] sm:$0xff]  ;;  %v61_v53 = vld [vmem:[#allocation2 + $0x118] sm:$0xff]  ;;  %v60_v54 = vld [vmem:[#allocation2 + $0x110] sm:$0xff] }
  0x1e   :  { %382 = vmatpush3.msra.mxu0 %v34_v13  ;;  %417 = vmatpush3.msra.mxu1 %v51_v18  ;;  %v314_v56 = vld [vmem:[#allocation2 + $0x108] ss:$0 sm:$0xff]  ;;  %v315_v61 = vld [vmem:[#allocation2 + $0x190] ss:$0 sm:$0xff] }
  0x1f   :  { %383 = vmatprep.subr.mxu0 %v504_v0  ;;  %418 = vmatprep.subr.mxu1 %v504_v0 }
  0x20   :  { %384 = vmatpush3.msra.mxu0 %v33_v15  ;;  %419 = vmatpush3.msra.mxu1 %v50_v20 }
  0x21   :  { %385 = vmatprep.subr.mxu0 %v504_v0  ;;  %420 = vmatprep.subr.mxu1 %v504_v0 }
  0x22   :  { %386 = vmatpush3.msra.mxu0 %v32_v17  ;;  %421 = vmatpush3.msra.mxu1 %v49_v22 }
  0x23   :  { %387 = vmatprep.subr.mxu0 %v504_v0  ;;  %422 = vmatprep.subr.mxu1 %v504_v0 }
  0x24   :  { %388 = vmatpush3.msra.mxu0 %v31_v19  ;;  %423 = vmatpush3.msra.mxu1 %v48_v24 }
  0x25   :  { %389 = vmatprep.subr.mxu0 %v504_v0  ;;  %424 = vmatprep.subr.mxu1 %v504_v0 }
  0x26   :  { %390 = vmatpush3.msra.mxu0 %v30_v21  ;;  %425 = vmatpush3.msra.mxu1 %v47_v26 }
  0x27   :  { %391 = vmatprep.subr.mxu0 %v504_v0  ;;  %426 = vmatprep.subr.mxu1 %v504_v0 }
  0x28   :  { %392 = vmatpush3.msra.mxu0 %v29_v23  ;;  %427 = vmatpush3.msra.mxu1 %v46_v28 }
  0x29   :  { %393 = vmatprep.subr.mxu0 %v504_v0  ;;  %428 = vmatprep.subr.mxu1 %v504_v0 }
  0x2a   :  { %394 = vmatpush3.msra.mxu0 %v28_v25  ;;  %429 = vmatpush3.msra.mxu1 %v45_v31 }
  0x2b   :  { %395 = vmatprep.subr.mxu0 %v504_v0  ;;  %430 = vmatprep.subr.mxu1 %v504_v0 }
  0x2c   :  { %396 = vmatpush3.msra.mxu0 %v27_v27  ;;  %431 = vmatpush3.msra.mxu1 %v44_v32 }
  0x2d   :  { %397 = vmatprep.subr.mxu0 %v504_v0  ;;  %432 = vmatprep.subr.mxu1 %v504_v0 }
  0x2e   :  { %398 = vmatpush3.msra.mxu0 %v26_v29  ;;  %433 = vmatpush3.msra.mxu1 %v43_v33 }
  0x2f   :  { %400 = vmatmul.mubr.f32.vlgmr.msra.gmra.mxu0 %v559_v30  ;;  %437 = vmatprep.subr.mxu0 %v504_v0 }
  0x30   :  { %469 = vmatprep.mubr.msk.f32.mxu0 %vm505_vm0, %v504_v0  ;;  %438 = vmatpush3.msra.mxu0 %v75_v34 }
  0x31   :  { %439 = vmatprep.subr.mxu0 %v504_v0  ;;  %478 = vset.pattern.permute.xlu0 %v506_v55 }
  0x32   :  { %440 = vmatpush3.msra.mxu0 %v74_v35  ;;  %303 = vperm.xlu0 %478, %v559_v30  }
  0x33   :  { %441 = vmatprep.subr.mxu0 %v504_v0 }
  0x34   :  { %442 = vmatpush3.msra.mxu0 %v73_v36 }
  0x35   :  { %443 = vmatprep.subr.mxu0 %v504_v0 }
  0x36   :  { %444 = vmatpush3.msra.mxu0 %v72_v37 }
  0x37   :  { %445 = vmatprep.subr.mxu0 %v504_v0 }
  0x38   :  { %446 = vmatpush3.msra.mxu0 %v71_v38 }
  0x39   :  { %447 = vmatprep.subr.mxu0 %v504_v0 }
  0x3a   :  { %448 = vmatpush3.msra.mxu0 %v70_v39 }
  0x3b   :  { %449 = vmatprep.subr.mxu0 %v504_v0 }
  0x3c   :  { %450 = vmatpush3.msra.mxu0 %v69_v40 }
  0x3d   :  { %451 = vmatprep.subr.mxu0 %v504_v0 }
  0x3e   :  { %452 = vmatpush3.msra.mxu0 %v68_v41 }
  0x3f   :  { %453 = vmatprep.subr.mxu0 %v504_v0 }
  0x40   :  { %454 = vmatpush3.msra.mxu0 %v67_v42 }
  0x41   :  { %455 = vmatprep.subr.mxu0 %v504_v0 }
  0x42   :  { %456 = vmatpush3.msra.mxu0 %v66_v43 }
  0x43   :  { %457 = vmatprep.subr.mxu0 %v504_v0 }
  0x44   :  { %458 = vmatpush3.msra.mxu0 %v65_v44 }
  0x45   :  { %459 = vmatprep.subr.mxu0 %v504_v0 }
  0x46   :  { %460 = vmatpush3.msra.mxu0 %v64_v45 }
  0x47   :  { %461 = vmatprep.subr.mxu0 %v504_v0 }
  0x48   :  { %462 = vmatpush3.msra.mxu0 %v63_v46 }
  0x49   :  { %463 = vmatprep.subr.mxu0 %v504_v0 }
  0x4a   :  { %464 = vmatpush3.msra.mxu0 %v62_v52 }
  0x4b   :  { %465 = vmatprep.subr.mxu0 %v504_v0 }
  0x4c   :  { %466 = vmatpush3.msra.mxu0 %v61_v53 }
  0x4d   :  { %467 = vmatprep.subr.mxu0 %v504_v0 }
  0x4e   :  { %468 = vmatpush3.msra.mxu0 %v60_v54 }
  0xad   :  { %v304_v63 = vpop.permute.xlu0 %303 }
  0xef   :  { %v147_v48 = vpop.f32.mrf.mxu0 }
  0xf0   :  { %v148_v49 = vadd.f32 %v313_v47, %v147_v48 }
  0xf1   :  { %v401_v50 = vpop.f32.mrf.mxu0 }
  0xf2   :  { %v151_v51 = vmax.f32 %v148_v49, 0.0 }
  0xf4   :  { %435 = vmatmul.mubr.f32.vlgmr.msra.gmra.mxu1 %v151_v51 }
 0x1b4   :  { %v222_v57 = vpop.f32.mrf.mxu1 }
 0x1b5   :  { %v223_v58 = vadd.f32 %v314_v56, %v222_v57 }
 0x1b6   :  { %v436_v59 = vpop.f32.mrf.mxu1 }
 0x1b7   :  { %v226_v60 = vmax.f32 %v223_v58, 0.0 }
 0x1b9   :  { %470 = vmatmul.mubr.f32.vlgmr.msra.gmra.mxu0 %v226_v60 }
 0x279   :  { %v297_v62 = vpop.f32.mrf.mxu0 }
 0x27a   :  { %v298_v1 = vadd.f32 %v315_v61, %v297_v62 }
 0x27b   :  { %v471_v2 = vpop.f32.mrf.mxu0 }
 0x27c   :  { %v306_v3 = vmul.f32 %v304_v63, %v298_v1 }
 0x27e   :  { %307 = vst [vmem:[%s591_s2] sm:$0xff] %v306_v3 }
 0x27f   :  { %312 = vsyncpa [#allocation3], 1 }

</bundles_post_ra>
